<compile_context>
chip_gen: v7x
topology: tpu7x:2x2x1
jax: 0.10.0
libtpu: 0.0.40
codegen_flags: <defaults>
</compile_context>

<pallas_src>
import math

import jax
import jax.numpy as jnp
from jax.experimental import pallas as pl
from jax.experimental.pallas import tpu as pltpu


_STEP_BYTE_TARGET = 16 * 1024 * 1024   # combined (in + out) bytes per grid step
_VMEM_CAP_FALLBACK = 64 * 1024 * 1024  # conservative default: v7x per-TC VMEM

_vmem_cap_cache = None


def _vmem_capacity_bytes():
    """Physical per-TensorCore VMEM capacity, with a conservative fallback."""
    global _vmem_cap_cache
    if _vmem_cap_cache is None:
        cap = 0
        try:
            cap = int(pltpu.get_tpu_info().vmem_capacity_bytes)
        except Exception:
            cap = 0
        _vmem_cap_cache = cap if cap > 0 else _VMEM_CAP_FALLBACK
    return _vmem_cap_cache


def _round_up(x, m):
    return ((x + m - 1) // m) * m


def _round_down(x, m):
    return (x // m) * m


def _row_align(itemsize):
    # Sublane-packing multiple: 8 rows/vreg for 32-bit, 16 for bf16, 32 for int8/fp8.
    return max(8, 32 // itemsize)


def _pick_tile_m(M, D, itemsize, row_align, block_budget, step_target):
    """Byte-targeted row tile, clamped to the VMEM block budget, >= 2 grid steps."""
    per_row = 3 * D * itemsize                      # in (D) + out (2D) bytes per row
    budget_rows = max(block_budget // per_row, 1)
    tm = max(step_target // per_row, row_align)     # ~step_target bytes per step
    tm = min(tm, budget_rows)
    tm = max(_round_down(tm, row_align), row_align)

    # Guarantee >=2 (ideally >=4) grid steps when M allows, so v7x's two
    # TensorCores both get work under dimension_semantics=("parallel",).
    if M >= 4 * row_align:
        want_steps = 4
    elif M >= 2 * row_align:
        want_steps = 2
    else:
        want_steps = 1
    if want_steps > 1 and pl.cdiv(M, tm) < want_steps:
        tm = _round_up(pl.cdiv(M, want_steps), row_align)

    if tm >= M:
        tm = M                                      # full-extent block is always legal
    return tm


def _crelu_kernel(x_ref, o_ref):
    x = x_ref[...]
    d = x.shape[-1]
    # ReLU(x) -> first half of the last dim, ReLU(-x) -> second half.
    # Both stores are full-width, lane-aligned slabs when D % 128 == 0.
    o_ref[:, :d] = jnp.maximum(x, 0)
    o_ref[:, d:] = jnp.maximum(-x, 0)


def _crelu_split_kernel(x_ref, pos_ref, neg_ref):
    x = x_ref[...]
    pos_ref[...] = jnp.maximum(x, 0)
    neg_ref[...] = jnp.maximum(-x, 0)


def _crelu_flat(x2, M, D, itemsize, row_align, block_budget, step_target,
                vmem_cap, tile_m):
    """Main path: flat (M, 2D) output, 1-D grid over row tiles."""
    budget_rows = max(_round_down(block_budget // (3 * D * itemsize), row_align),
                      row_align)
    if tile_m is None:
        tm = _pick_tile_m(M, D, itemsize, row_align, block_budget, step_target)
    else:
        tm = min(int(tile_m), M)
        if tm < M or 3 * M * D * itemsize > block_budget:
            # Round to the sublane-packing multiple ((8,128) rule) and clamp to
            # the VMEM budget instead of letting an oversized user tile OOM.
            tm = max(_round_down(tm, row_align), row_align)
            tm = min(tm, budget_rows)
            if tm >= M:
                tm = M

    block_bytes = 3 * tm * D * itemsize
    # Double-buffered blocks + headroom; never below the block footprint, never
    # above ~5/8 of physical VMEM (leaves room for compiler-internal scratch).
    vmem_limit = int(min(max(2 * block_bytes + (4 << 20), 16 << 20),
                         (vmem_cap * 5) // 8))

    return pl.pallas_call(
        _crelu_kernel,
        out_shape=jax.ShapeDtypeStruct((M, 2 * D), x2.dtype),
        grid_spec=pltpu.PrefetchScalarGridSpec(
            num_scalar_prefetch=0,
            grid=(pl.cdiv(M, tm),),          # ragged tail handled by Pallas masking
            in_specs=[pl.BlockSpec((tm, D), lambda i: (i, 0))],
            out_specs=pl.BlockSpec((tm, 2 * D), lambda i: (i, 0)),
        ),
        compiler_params=pltpu.CompilerParams(
            dimension_semantics=("parallel",),
            vmem_limit_bytes=vmem_limit,
        ),
        cost_estimate=pl.CostEstimate(
            flops=2 * M * D,
            bytes_accessed=3 * M * D * itemsize,
            transcendentals=0,
        ),
    )(x2)


def _crelu_feature_tiled(x2, M, D, itemsize, row_align, block_budget, step_target,
                         vmem_cap, tile_m, tile_d):
    """Fallback for pathologically large D (or a user-forced tile_d).

    Grid over (row tiles, lane-aligned D chunks); two flat (M, D) outputs
    (relu(x) and relu(-x)) written as full lane-dense blocks, concatenated
    outside the kernel.  One extra HBM pass for the concat, but it degrades
    gracefully instead of overflowing VMEM with a (tm, 2D) block.
    """
    # TODO(synk): a single-pass variant with an (M, 2, D) out_shape (accepting
    # the sublane-padded 2-wide middle dim) would avoid the concat pass.
    max_cols = max(block_budget // (3 * row_align * itemsize), 128)
    td = min(int(tile_d), max_cols) if tile_d is not None else max_cols
    td = max(_round_down(td, 128), 128)      # lane-aligned chunks
    if td >= D:
        td = D                               # full-extent feature block

    if tile_m is None:
        tm = _pick_tile_m(M, td, itemsize, row_align, block_budget, step_target)
    else:
        tm = min(int(tile_m), M)
        if tm < M:
            tm = max(_round_down(tm, row_align), row_align)
            budget_rows = max(
                _round_down(block_budget // (3 * td * itemsize), row_align), row_align)
            tm = min(tm, budget_rows)
            if tm >= M:
                tm = M

    block_bytes = 3 * tm * td * itemsize
    vmem_limit = int(min(max(2 * block_bytes + (4 << 20), 16 << 20),
                         (vmem_cap * 5) // 8))

    pos, neg = pl.pallas_call(
        _crelu_split_kernel,
        out_shape=(jax.ShapeDtypeStruct((M, D), x2.dtype),
                   jax.ShapeDtypeStruct((M, D), x2.dtype)),
        grid_spec=pltpu.PrefetchScalarGridSpec(
            num_scalar_prefetch=0,
            grid=(pl.cdiv(M, tm), pl.cdiv(D, td)),
            in_specs=[pl.BlockSpec((tm, td), lambda i, j: (i, j))],
            out_specs=[pl.BlockSpec((tm, td), lambda i, j: (i, j)),
                       pl.BlockSpec((tm, td), lambda i, j: (i, j))],
        ),
        compiler_params=pltpu.CompilerParams(
            dimension_semantics=("parallel", "parallel"),
            vmem_limit_bytes=vmem_limit,
        ),
        cost_estimate=pl.CostEstimate(
            flops=2 * M * D,
            bytes_accessed=3 * M * D * itemsize,
            transcendentals=0,
        ),
    )(x2)
    return jnp.concatenate([pos, neg], axis=-1)


def crelu(x, *, tile_m=None, tile_d=None):
    """CRELU forward: x (..., D) -> (..., 2*D) = concat([relu(x), relu(-x)], -1)."""
    orig_shape = x.shape
    D = int(orig_shape[-1])
    M = int(math.prod(orig_shape[:-1]))
    if M == 0 or D == 0:
        return jnp.concatenate([jnp.maximum(x, 0), jnp.maximum(-x, 0)], axis=-1)

    x2 = x.reshape(M, D)
    itemsize = jnp.dtype(x.dtype).itemsize
    row_align = _row_align(itemsize)

    vmem_cap = _vmem_capacity_bytes()
    block_budget = vmem_cap // 4                 # one (in + out) block; 2x double-buffered
    step_target = min(_STEP_BYTE_TARGET, block_budget)

    min_rows = min(M, row_align)
    needs_d_tiling = ((tile_d is not None and int(tile_d) < D)
                      or 3 * min_rows * D * itemsize > block_budget)

    if needs_d_tiling:
        out2 = _crelu_feature_tiled(x2, M, D, itemsize, row_align, block_budget,
                                    step_target, vmem_cap, tile_m, tile_d)
    else:
        out2 = _crelu_flat(x2, M, D, itemsize, row_align, block_budget,
                           step_target, vmem_cap, tile_m)

    return out2.reshape(*orig_shape[:-1], 2 * D)


def _reference(x):
    return jnp.concatenate([jnp.maximum(x, 0), jnp.maximum(-x, 0)], axis=-1)


if __name__ == "__main__":
    key = jax.random.PRNGKey(0)
    k1, k2, k3, k4 = jax.random.split(key, 4)

    # 1) Small shape consistent with the module: batch=2, seq=8, hidden=128.
    x = jax.random.normal(k1, (2, 8, 128), dtype=jnp.float32)
    y = jax.block_until_ready(crelu(x))
    ref = _reference(x)
    assert y.shape == ref.shape, (y.shape, ref.shape)
    assert jnp.allclose(y, ref), "mismatch vs reference (aligned case)"

    # 2) Ragged-M case: 21 rows with tile_m=8 -> 3 grid steps, masked tail block.
    x_r = jax.random.normal(k2, (3, 7, 128), dtype=jnp.float32)
    y_r = jax.block_until_ready(crelu(x_r, tile_m=8))
    ref_r = _reference(x_r)
    assert y_r.shape == ref_r.shape, (y_r.shape, ref_r.shape)
    assert jnp.allclose(y_r, ref_r), "mismatch vs reference (ragged case)"

    # 3) bf16 case: exercises the 16-row sublane-packing alignment.
    x_b = jax.random.normal(k3, (4, 8, 256), dtype=jnp.bfloat16)
    y_b = jax.block_until_ready(crelu(x_b))
    ref_b = _reference(x_b)
    assert y_b.shape == ref_b.shape, (y_b.shape, ref_b.shape)
    assert jnp.allclose(y_b.astype(jnp.float32), ref_b.astype(jnp.float32)), \
        "mismatch vs reference (bf16 case)"

    # 4) Forced feature-tiling path (the large-D fallback) at a small shape.
    x_d = jax.random.normal(k4, (2, 8, 256), dtype=jnp.float32)
    y_d = jax.block_until_ready(crelu(x_d, tile_d=128))
    ref_d = _reference(x_d)
    assert y_d.shape == ref_d.shape, (y_d.shape, ref_d.shape)
    assert jnp.allclose(y_d, ref_d), "mismatch vs reference (feature-tiled case)"

    print("KERNEL_OK")
</pallas_src>

<mosaic_0001>
module attributes {stable_mosaic.version = 11 : i64} {
  func.func @_crelu_kernel(%arg0: i32, %arg1: memref<8x128xf32, #tpu.memory_space<vmem>>, %arg2: memref<8x256xf32, #tpu.memory_space<vmem>>) attributes {dimension_semantics = [#tpu.dimension_semantics<parallel>], iteration_bounds = array<i64: 2>, scalar_prefetch = 0 : i64, scratch_operands = 0 : i64, tpu.core_type = #tpu.core_type<tc>, window_params = [{transform_indices = @transform_0, window_bounds = array<i64: 8, 128>}, {transform_indices = @transform_1, window_bounds = array<i64: 8, 256>}]} {
    %c0 = arith.constant 0 : index
    %c0_0 = arith.constant 0 : index
    %0 = vector.load %arg1[%c0, %c0_0] : memref<8x128xf32, #tpu.memory_space<vmem>>, vector<8x128xf32>
    %cst = arith.constant 0.000000e+00 : f32
    %1 = vector.broadcast %cst : f32 to vector<8x128xf32>
    %2 = arith.maximumf %0, %1 : vector<8x128xf32>
    %c0_1 = arith.constant 0 : index
    %c0_2 = arith.constant 0 : index
    %3 = vector.load %arg2[%c0_1, %c0_2] : memref<8x256xf32, #tpu.memory_space<vmem>>, vector<8x128xf32>
    tpu.vector_store %arg2[%c0_1, %c0_2], %2 {strides = array<i32>} : memref<8x256xf32, #tpu.memory_space<vmem>>, vector<8x128xf32>,
    %cst_3 = arith.constant 0.000000e+00 : f32
    %4 = vector.broadcast %cst_3 : f32 to vector<8x128xf32>
    %5 = arith.subf %4, %0 : vector<8x128xf32>
    %cst_4 = arith.constant 0.000000e+00 : f32
    %6 = vector.broadcast %cst_4 : f32 to vector<8x128xf32>
    %7 = arith.maximumf %5, %6 : vector<8x128xf32>
    %c0_5 = arith.constant 0 : index
    %c128 = arith.constant 128 : index
    %8 = vector.load %arg2[%c0_5, %c128] : memref<8x256xf32, #tpu.memory_space<vmem>>, vector<8x128xf32>
    tpu.vector_store %arg2[%c0_5, %c128], %7 {strides = array<i32>} : memref<8x256xf32, #tpu.memory_space<vmem>>, vector<8x128xf32>,
    return
  }
  func.func @transform_0(%arg0: i32) -> (i32, i32) {
    %c0_i32 = arith.constant 0 : i32
    %c0_i32_0 = arith.constant 0 : i32
    return %arg0, %c0_i32 : i32, i32
  }
  func.func @transform_1(%arg0: i32) -> (i32, i32) {
    %c0_i32 = arith.constant 0 : i32
    %c0_i32_0 = arith.constant 0 : i32
    return %arg0, %c0_i32 : i32, i32
  }
}

</mosaic_0001>

<bundles_post_ra>
// kernel: tpu_custom_call.1
= control target key start
LH: loop header
LB: loop body
LE: loop exit
PB: predicated region body
PF: predicated region fallthrough
CT: control target
= control target key end

     0   :  { %6 = vsyncpa [#allocation3], 0  ;;  %s555_s0 = inlined_call_operand.hbm [shape: f32[16,128], index: 0, kind: input, shape index: {}]   ;;  %s556_s1 = inlined_call_operand.hbm [shape: f32[16,256], index: 1, kind: output, shape index: {}]  }
   0x1   :  { %8 = vsyncpa [#allocation3 + $0x1], 0 }
   0x2   :  { %9 = vsyncpa [#allocation4], 0 }
   0x3   :  { %11 = vsyncpa [#allocation4 + $0x1], 0  ;;  %s393_s6 = smov 0   ;;  %s395_s7 = smov 0  }
   0x4   :  { %s397_s8 = smov 0   ;;  %s399_s9 = smov 0  }
   0x5 LB: > { %s414_s10 = sadd.s32 4294967295, %s379_s9   ;;  %s223_s11 = sadd.s32 4294967294, %s379_s9   ;;  %s379_s9 = sphi %s399_s9, %s571_s9   ;;  %s375_s8 = sphi %s397_s8, %s570_s8   ;;  %s371_s7 = sphi %s395_s7, %s569_s7   ;;  %s367_s6 = sphi %s393_s6, %s568_s6  }
   0x6   : > { %s418_s12 = sadd.s32 1, %s379_s9   ;;  %s24_s13 = sadd.s32 1, %s375_s8 }
   0x7   : > { %s21_s14 = ssub.s32 %s379_s9, %s418_s12  ;;  %p31_p0 = scmp.ne.s32.totalorder %s375_s8, %s371_s7 }
   0x8   : > { %p22_p1 = scmp.eq.s32.totalorder %s21_s14, 0  ;;  %p32_p2 = scmp.eq.s32.totalorder %s379_s9, 0 }
   0x9   : > { %p37_p3 = scmp.ne.s32.totalorder %s371_s7, %s367_s6  ;;  %p38_p4 = scmp.eq.s32.totalorder %s414_s10, 0 }
   0xa   : > { %s430_s15 = scalar_select %p22_p1, %s375_s8, %s24_s13  }
   0xb   : > { %p432_p5 = por %p32_p2, %p31_p0  ;;  %p436_p6 = por %p38_p4, %p37_p3 }
   0xc   : > { %p61_p7 = scmp.eq.s32.totalorder %s414_s10, 1  ;;  %p67_p8 = scmp.eq.s32.totalorder %s223_s11, 1 }
   0xd   : > { %p249_p10 = scmp.lt.s32.totalorder %s379_s9, 2  ;;  %s87_s20 = sand.u32 1, %s375_s8  }
   0xe   : > { %p443_p11 = por %p61_p7, %p31_p0  ;;  %p447_p12 = por %p67_p8, %p37_p3 }
   0xf   : > { %s227_s21 = sshll.u32 %s379_s9, 7  ;;  %s226_s22 = sshll.u32 %s87_s20, 3 }
  0x10   : > { %s560_s18 = scalar_select %p443_p11, 1, 0 }
  0x11   : > { %s561_s19 = scalar_select %p447_p12, 1, 0 }
  0x12   : > { %s456_s25 = scalar_lea.hbm %s555_s0, %s227_s21  ;;  %s91_s26 = scalar_lea.vmem [#allocation2], %s226_s22 }
  0x13   : > { %s98_s27 = sshll.u32 %s91_s26, 4  ;;  %p460_p13 = pnand %p249_p10, %p432_p5  ;;  %s464_s27 = int_to_ptr.vmem [resolvable:$true] %s98_s27 }
  0x14   : > { %s88_s29 = scalar_lea.sflag [#allocation3], %s87_s20  ;;  %s283_s30 = scalar_lea.hbm %s456_s25, 128 }
  0x15   : > { %p284_p2 = scmp.ne.s32.totalorder %s456_s25, %s283_s30  ;;  %p285_p3 = pneg %p460_p13 }
  0x16   : > { %s288_s4 = scalar_lea.hbm %s555_s0, 256  ;;  %p289_p5 = scmp.lt.u32.totalorder %s456_s25, %s555_s0 }
  0x17   : > { %p286_p4 = pnand %p285_p3, %p284_p2  ;;  %p290_p8 = scmp.lt.u32.totalorder %s288_s4, %s283_s30 }
  0x18   : > { %p292_p9 = scmp.lt.u32.totalorder %s283_s30, %s456_s25 }
  0x19   : > { %p287_p7 = pneg %p286_p4  ;;  %p291_p10 = por %p290_p8, %p289_p5 }
  0x1b   : > { %p293_p0 = por %p292_p9, %p291_p10 }
  0x1d   : > { %p294_p1 = pnand %p293_p0, %p287_p7 }
  0x1f   : > { %297 = shalt.err (!%p294_p1)
}
  0x20   : > { %s298_s13 = scalar_lea.vmem %s464_s27, 128  ;;  %s381_s14 = smov [#allocation2]  }
  0x21   : > { %p299_p2 = scmp.ne.s32.totalorder %s464_s27, %s298_s13  ;;  %s303_s16 = sshll.u32 %s381_s14, 4  ;;  %s304_s16 = int_to_ptr.vmem [resolvable:$false] %s303_s16 }
  0x22   : > { %s305_s20 = scalar_lea.vmem %s304_s16, 256  ;;  %p306_p11 = scmp.lt.s32.totalorder %s464_s27, %s304_s16 }
  0x23   : > { %p301_p4 = pnand %p299_p2, %p285_p3  ;;  %p307_p5 = scmp.lt.s32.totalorder %s305_s20, %s298_s13 }
  0x25   : > { %p302_p12 = pneg %p301_p4  ;;  %p308_p8 = por %p307_p5, %p306_p11 }
  0x27   : > { %p309_p9 = pnand %p308_p8, %p302_p12 }
  0x29   : > { %312 = shalt.err (!%p309_p9)
}
  0x2a   : > { %244 = dma.hbm_to_vmem [thread:$0]  (!%p460_p13), %s456_s25, 128, %s464_s27, %s88_s29  }
  0x2b   : > { %p563_p0 = scmp.lt.s32.totalorder %s379_s9, 3  ;;  %p564_p1 = scmp.ge.s32.totalorder %s379_s9, 1 }
  0x2d   : > { %p104_p3 = pnand %p564_p1, %p563_p0 }
  0x2e   : > { %s498_s21 = sand.u32 (!%p104_p3), 1, %s371_s7  }
  0x2f   : > { %107 = sbr.rel (%p104_p3) target bundleno = 81 (0x51), region = 24  ;;  %s229_s22 = sshll.u32 (!%p104_p3), %s498_s21, 3 }
  0x30   : > { %s110_s23 = scalar_lea.sflag (!%p104_p3), [#allocation3], %s498_s21  ;;  %s113_s24 = scalar_lea.vmem (!%p104_p3), [#allocation2], %s229_s22 }
  0x36   : > { %358 = dma.done.wait (%p436_p6), %s110_s23, 128  }
  0x37   : > { %360 = vsyncadd (%p436_p6), %s110_s23, 4294967168  ;;  %s230_s25 = sshll.u32 %s498_s21, 4  ;;  %v132_v0 = vld [vmem:[%s113_s24] sm:$0xff]  ;;  %s236_s28 = sshll.u32 %s414_s10, 8 }
  0x38   : > { %s131_s26 = scalar_lea.vmem [#allocation5], %s230_s25  ;;  %v133_v1 = vmax.f32 %v132_v0, 0.0  ;;  %v135_v2 = vsub.f32 0.0, %v132_v0  ;;  %s513_s30 = scalar_lea.hbm %s556_s1, %s236_s28 }
  0x39   : > { %s153_s27 = sshll.u32 %s131_s26, 4  ;;  %s139_s2 = scalar_lea.sflag [#allocation4], %s498_s21  ;;  %s508_s27 = int_to_ptr.vmem [resolvable:$true] %s153_s27 }
  0x3a   : > { %134 = vst [vmem:[%s131_s26] sm:$0xff] %v133_v1  ;;  %v136_v3 = vmax.f32 %v135_v2, 0.0  ;;  %s313_s3 = scalar_lea.vmem %s508_s27, 256  ;;  %p565_p11 = scmp.ne.s32.totalorder %s560_s18, 0 }
  0x3b   : > { %p314_p6 = scmp.ne.s32.totalorder %s508_s27, %s313_s3  ;;  %s382_s10 = smov [#allocation5]  }
  0x3c   : > { %137 = vst [vmem:[%s131_s26 + $0x8] sm:$0xff] %v136_v3  ;;  %s317_s4 = sshll.u32 %s382_s10, 4  ;;  %s318_s4 = int_to_ptr.vmem [resolvable:$false] %s317_s4 }
  0x3d   : > { %p315_p12 = pnand %p314_p6, %p565_p11  ;;  %s319_s5 = scalar_lea.vmem %s318_s4, 512 }
  0x3e   : > { %p320_p7 = scmp.lt.s32.totalorder %s508_s27, %s318_s4  ;;  %p321_p10 = scmp.lt.s32.totalorder %s319_s5, %s313_s3 }
  0x3f   : > { %p316_p13 = pneg %p315_p12 }
  0x40   : > { %p322_p2 = por %p321_p10, %p320_p7 }
  0x42   : > { %p323_p4 = pnand %p322_p2, %p316_p13 }
  0x44   : > { %326 = shalt.err (!%p323_p4)
}
  0x45   : > { %s327_s11 = scalar_lea.hbm %s513_s30, 256  ;;  %s331_s16 = scalar_lea.hbm %s556_s1, 512 }
  0x46   : > { %p328_p5 = scmp.ne.s32.totalorder %s513_s30, %s327_s11  ;;  %p332_p0 = scmp.lt.u32.totalorder %s513_s30, %s556_s1 }
  0x47   : > { %p333_p1 = scmp.lt.u32.totalorder %s331_s16, %s327_s11  ;;  %p335_p6 = scmp.lt.u32.totalorder %s327_s11, %s513_s30 }
  0x48   : > { %p329_p8 = pnand %p328_p5, %p565_p11 }
  0x49   : > { %p334_p3 = por %p333_p1, %p332_p0 }
  0x4a   : > { %p330_p9 = pneg %p329_p8 }
  0x4b   : > { %p336_p12 = por %p335_p6, %p334_p3 }
  0x4d   : > { %p337_p13 = pnand %p336_p12, %p330_p9 }
  0x4f   : > { %340 = shalt.err (!%p337_p13)
}
  0x50   : > { %239 = dma.vmem_to_hbm [thread:$0]  (%p565_p11), %s508_s27, 256, %s513_s30, %s139_s2  }
  0x51 PF: > { %s165_s22 = sand.u32 1, %s367_s6   ;;  %p566_p7 = scmp.ne.s32.totalorder %s561_s19, 0 }
  0x52   : > { %p567_p10 = scmp.ge.s32.totalorder %s379_s9, 2  ;;  %s166_s23 = scalar_lea.sflag [#allocation4], %s165_s22 }
  0x54   : > { %p246_p2 = pnand %p567_p10, %p566_p7 }
  0x56   : > { %362 = dma.done.wait (!%p246_p2), %s166_s23, 256  }
  0x57   : > { %364 = vsyncadd (!%p246_p2), %s166_s23, 4294967040  ;;  %p14_p4 = scmp.ge.s32.totalorder %s418_s12, 4   ;;  %s568_s6 = smov %s371_s7 }
  0x58   : > { %s569_s7 = smov %s375_s8  ;;  %s570_s8 = smov %s430_s15 }
  0x59   : > { %s571_s9 = smov %s418_s12  ;;  %16 = sbr.rel (!%p14_p4) target bundleno = 5 (0x5), region = 69 }
  0x60   :  { %171 = vsyncpa [#allocation3], 1 }
  0x61   :  { %173 = vsyncpa [#allocation3 + $0x1], 1 }
  0x62   :  { %174 = vsyncpa [#allocation4], 1 }
  0x63   :  { %176 = vsyncpa [#allocation4 + $0x1], 1 }

</bundles_post_ra>
